<compile_context>
chip_gen: v6e
topology: v6e:2x2x1
jax: 0.10.0
libtpu: 0.0.40
codegen_flags: <defaults>
</compile_context>

<pallas_src>
import math

import jax
import jax.numpy as jnp
from jax import lax
from jax.experimental import pallas as pl
from jax.experimental.pallas import tpu as pltpu


def _round_up(x, m):
    return (x + m - 1) // m * m


def _tpu_vmem_bytes():
    """Physical per-core VMEM (generation-aware); conservative default = v7x (64 MiB)."""
    try:
        cap = getattr(pltpu.get_tpu_info(), "vmem_capacity_bytes", None)
        if cap:
            return int(cap)
    except Exception:
        pass
    return 64 * 1024 * 1024


def _exact_dot(one_hot, tbl_ref):
    # One-hot row selection must be exact; for f32 tables force a full-precision
    # MXU pass (bf16 tables are natively exact on the MXU).
    prec = lax.Precision.HIGHEST if tbl_ref.dtype == jnp.float32 else None
    return jnp.dot(one_hot, tbl_ref[...], precision=prec,
                   preferred_element_type=jnp.float32)


# --------------------------------------------------------------------------
# Path A: tables VMEM-resident, gather = two one-hot MXU matmuls.
# --------------------------------------------------------------------------
def _onehot_kernel(tok_ids_ref, pos_ids_ref, tok_tbl_ref, pos_tbl_ref, out_ref):
    st = out_ref.shape[1]
    V = tok_tbl_ref.shape[0]
    P = pos_tbl_ref.shape[0]

    tok_ids = tok_ids_ref[0]                     # (st, 1) int32, sublane-major
    pos_ids = pos_ids_ref[0]                     # (st, 1) int32

    tok_oh = (tok_ids == lax.broadcasted_iota(jnp.int32, (st, V), 1)
              ).astype(tok_tbl_ref.dtype)
    pos_oh = (pos_ids == lax.broadcasted_iota(jnp.int32, (st, P), 1)
              ).astype(pos_tbl_ref.dtype)

    acc = _exact_dot(tok_oh, tok_tbl_ref)
    acc = acc + _exact_dot(pos_oh, pos_tbl_ref)
    out_ref[0] = acc.astype(out_ref.dtype)


# --------------------------------------------------------------------------
# Path B: large-vocab fallback.  Token table stays in HBM; rows are gathered
# with per-row DMAs sharing one semaphore + one accumulated wait.  Positions
# still use the VMEM-resident one-hot path (the positional table is tiny).
# --------------------------------------------------------------------------
def _hbm_gather_kernel(tok_ids_smem, pos_ids_ref, tok_tbl_hbm, pos_tbl_ref,
                       out_ref, tok_buf, sem):
    st, _ = tok_buf.shape
    P = pos_tbl_ref.shape[0]

    # Issue every token-row gather up front; all copies target one semaphore.
    def issue(i, carry):
        t = tok_ids_smem[0, i]
        pltpu.make_async_copy(tok_tbl_hbm.at[pl.ds(t, 1), :],
                              tok_buf.at[pl.ds(i, 1), :],
                              sem.at[0]).start()
        return carry

    lax.fori_loop(0, st, issue, 0, unroll=8)

    # Positional rows via one-hot MXU matmul while the row DMAs are in flight.
    pos_oh = (pos_ids_ref[0] ==
              lax.broadcasted_iota(jnp.int32, (st, P), 1)).astype(pos_tbl_ref.dtype)
    acc = _exact_dot(pos_oh, pos_tbl_ref)

    # Single accumulated wait: DMA semaphores count bytes; tok_buf's byte count
    # equals the sum of all row copies issued above.
    pltpu.make_async_copy(tok_buf, tok_buf, sem.at[0]).wait()
    # TODO(synk): double-buffer the row gather across grid steps to hide DMA
    # latency behind the previous tile's compute/store.

    out_ref[0] = (tok_buf[...].astype(jnp.float32) + acc).astype(out_ref.dtype)


# --------------------------------------------------------------------------
# Wrapper: CombinedEmbedding.forward
# --------------------------------------------------------------------------
def combined_embedding(tokens, tok_table, pos_table, *, padding_idx=0,
                       seq_tile=None, out_dtype=None,
                       onehot_vocab_limit=2048, force_hbm_gather=False):
    """Returns (embeddings, padding_mask) like CombinedEmbedding.forward."""
    B, S = tokens.shape
    V, D = tok_table.shape
    P, Dp = pos_table.shape
    assert Dp == D
    out_dtype = jnp.dtype(out_dtype) if out_dtype is not None else tok_table.dtype

    # ---- forward's integer prologue (tiny; matches the module exactly) ----
    padding_mask = tokens == padding_idx
    positions = jnp.cumsum((~padding_mask).astype(jnp.int32), axis=-1)
    positions = jnp.where(padding_mask, 0, positions)
    # TODO(synk): ConstantPositionalEmbedding regrows its buffer when
    # seq_length >= table size (host-side mutation); precompute the table
    # large enough instead — positions are clamped here for safety.
    positions = jnp.minimum(positions, P - 1).astype(jnp.int32)
    tok_ids = jnp.clip(tokens.astype(jnp.int32), 0, V - 1)

    # ---- sequence tile: big lane-dense tiles amortize per-step overhead ----
    if seq_tile is None:
        seq_tile = next((t for t in (512, 256, 128) if S % t == 0), S)
    assert S % seq_tile == 0, "S must be divisible by seq_tile"
    grid = (B, S // seq_tile)

    # ---- generation-aware table-residency decision ----
    cap = _tpu_vmem_bytes()
    tbl_bytes = (V * D * tok_table.dtype.itemsize
                 + P * D * pos_table.dtype.itemsize)
    use_onehot = (not force_hbm_gather
                  and V <= onehot_vocab_limit
                  and tbl_bytes <= cap // 4)

    out_isz = jnp.dtype(out_dtype).itemsize
    ids_block_bytes = 4 * _round_up(seq_tile, 8) * 128 * 4   # 2 inputs x 2 bufs, lane-padded
    out_block_bytes = 2 * seq_tile * _round_up(D, 128) * out_isz

    out_shape = jax.ShapeDtypeStruct((B, S, D), out_dtype)
    out_spec = pl.BlockSpec((1, seq_tile, D), lambda b, q: (b, q, 0))
    ids_spec = pl.BlockSpec((1, seq_tile, 1), lambda b, q: (b, q, 0))
    pos_tbl_spec = pl.BlockSpec((P, D), lambda b, q: (0, 0))   # VMEM-resident

    if use_onehot:
        onehot_bytes = seq_tile * (_round_up(V, 128) + _round_up(P, 128)) * 4
        need = (2 * tbl_bytes + out_block_bytes + ids_block_bytes
                + onehot_bytes + (4 << 20))
        vmem_limit = int(min(cap * 0.9, max(need, 32 << 20)))
        out = pl.pallas_call(
            _onehot_kernel,
            out_shape=out_shape,
            grid=grid,
            in_specs=[ids_spec, ids_spec,
                      pl.BlockSpec((V, D), lambda b, q: (0, 0)),   # VMEM-resident
                      pos_tbl_spec],
            out_specs=out_spec,
            compiler_params=pltpu.CompilerParams(
                dimension_semantics=("parallel", "parallel"),
                vmem_limit_bytes=vmem_limit),
            cost_estimate=pl.CostEstimate(
                flops=2 * B * S * (V + P) * D + B * S * D,
                transcendentals=0,
                bytes_accessed=tbl_bytes + 2 * B * S * 4 + B * S * D * out_isz),
        )(tok_ids[..., None], positions[..., None], tok_table, pos_table)
    else:
        pos_bytes = P * D * pos_table.dtype.itemsize
        need = (2 * pos_bytes + out_block_bytes + ids_block_bytes
                + seq_tile * _round_up(D, 128) * tok_table.dtype.itemsize
                + seq_tile * _round_up(P, 128) * 4 + (4 << 20))
        vmem_limit = int(min(cap * 0.9, max(need, 32 << 20)))
        out = pl.pallas_call(
            _hbm_gather_kernel,
            out_shape=out_shape,
            grid=grid,
            in_specs=[
                pl.BlockSpec((1, seq_tile), lambda b, q: (b, q),
                             memory_space=pltpu.MemorySpace.SMEM),   # ids as scalars
                ids_spec,                                            # positions as vector
                pl.BlockSpec(memory_space=pl.ANY),                   # token table in HBM
                pos_tbl_spec,
            ],
            out_specs=out_spec,
            scratch_shapes=[
                pltpu.VMEM((seq_tile, D), tok_table.dtype),
                pltpu.SemaphoreType.DMA((1,)),                       # one shared sem
            ],
            compiler_params=pltpu.CompilerParams(
                dimension_semantics=("parallel", "arbitrary"),
                vmem_limit_bytes=vmem_limit),
            cost_estimate=pl.CostEstimate(
                flops=2 * B * S * P * D + B * S * D,
                transcendentals=0,
                bytes_accessed=(B * S * D * tok_table.dtype.itemsize + pos_bytes
                                + 2 * B * S * 4 + B * S * D * out_isz)),
        )(tok_ids, positions[..., None], tok_table, pos_table)

    return out, padding_mask


# --------------------------------------------------------------------------
# ConstantPositionalEmbedding.get_embedding (sinusoidal table), JAX version.
# --------------------------------------------------------------------------
def constant_positional_table(n_embeddings, embedding_dim):
    n = n_embeddings + 1
    half = embedding_dim // 2
    freq = jnp.exp(jnp.arange(half, dtype=jnp.float32)
                   * -(math.log(10000.0) / (half - 1)))
    ang = jnp.arange(n, dtype=jnp.float32)[:, None] * freq[None, :]
    emb = jnp.concatenate([jnp.sin(ang), jnp.cos(ang)], axis=1).reshape(n, -1)
    emb = emb.at[0, :].set(0.0)
    if embedding_dim % 2:
        emb = jnp.concatenate([emb, jnp.zeros((n, 1), jnp.float32)], axis=1)
    return emb


# --------------------------------------------------------------------------
# Pure-JAX reference of CombinedEmbedding.forward
# --------------------------------------------------------------------------
def _reference(tokens, tok_table, pos_table, padding_idx):
    mask = tokens == padding_idx
    pos = jnp.cumsum((~mask).astype(jnp.int32), axis=-1)
    pos = jnp.where(mask, 0, pos)
    pos = jnp.minimum(pos, pos_table.shape[0] - 1)
    return tok_table[tokens] + pos_table[pos], mask


if __name__ == "__main__":
    B, S = 2, 8
    vocab = 64            # n_embeddings
    n_pos = 16            # n_pos_embeddings (learnable table has n_pos + 1 rows)
    D = 128               # embedding_dim (multiple of 128 -> lane-dense stores)
    padding_idx = 0

    key = jax.random.PRNGKey(0)
    k_tok, k_tbl, k_pos = jax.random.split(key, 3)

    tokens = jax.random.randint(k_tok, (B, S), 1, vocab, dtype=jnp.int32)
    tokens = tokens.at[1, -3:].set(padding_idx)     # pad the tail of batch 1

    # token embedding: normal(std=0.02), zeroed padding row (nn.Embedding init)
    tok_table = 0.02 * jax.random.normal(k_tbl, (vocab, D), jnp.float32)
    tok_table = tok_table.at[padding_idx].set(0.0)

    # learnable positional embedding: (n_pos + 1, D), normal(std=0.01), row 0 = 0
    pos_table_learn = 0.01 * jax.random.normal(k_pos, (n_pos + 1, D), jnp.float32)
    pos_table_learn = pos_table_learn.at[0].set(0.0)
    # constant (sinusoidal) positional embedding alternative
    pos_table_const = constant_positional_table(n_pos, D)

    for pos_table in (pos_table_learn, pos_table_const):
        out, mask = combined_embedding(tokens, tok_table, pos_table,
                                       padding_idx=padding_idx)
        out = jax.block_until_ready(out)
        ref_out, ref_mask = _reference(tokens, tok_table, pos_table, padding_idx)
        assert out.shape == (B, S, D)
        assert bool(jnp.all(mask == ref_mask))
        err = float(jnp.max(jnp.abs(out - ref_out)))
        assert err < 1e-5, f"max abs err {err}"

    # bf16 tables: halves table + output-store HBM traffic (feedback #11).
    out_bf16, _ = combined_embedding(tokens,
                                     tok_table.astype(jnp.bfloat16),
                                     pos_table_learn.astype(jnp.bfloat16),
                                     padding_idx=padding_idx)
    out_bf16 = jax.block_until_ready(out_bf16)
    ref_bf16, _ = _reference(tokens, tok_table.astype(jnp.bfloat16),
                             pos_table_learn.astype(jnp.bfloat16), padding_idx)
    err = float(jnp.max(jnp.abs(out_bf16.astype(jnp.float32)
                                - ref_bf16.astype(jnp.float32))))
    assert err < 1e-2, f"bf16 max abs err {err}"

    print("KERNEL_OK")
</pallas_src>

<mosaic_0001>
module attributes {stable_mosaic.version = 11 : i64} {
  func.func @_onehot_kernel(%arg0: i32, %arg1: i32, %arg2: memref<1x8x1xi32, #tpu.memory_space<vmem>>, %arg3: memref<1x8x1xi32, #tpu.memory_space<vmem>>, %arg4: memref<64x128xf32, #tpu.memory_space<vmem>>, %arg5: memref<17x128xf32, #tpu.memory_space<vmem>>, %arg6: memref<1x8x128xf32, #tpu.memory_space<vmem>>) attributes {dimension_semantics = [#tpu.dimension_semantics<parallel>, #tpu.dimension_semantics<parallel>], iteration_bounds = array<i64: 2, 1>, scalar_prefetch = 0 : i64, scratch_operands = 0 : i64, tpu.core_type = #tpu.core_type<tc>, window_params = [{transform_indices = @transform_0, window_bounds = array<i64: 1, 8, 1>}, {transform_indices = @transform_1, window_bounds = array<i64: 1, 8, 1>}, {pipeline_mode = #tpu.pipeline_mode<synchronous>, transform_indices = @transform_2, window_bounds = array<i64: 64, 128>}, {pipeline_mode = #tpu.pipeline_mode<synchronous>, transform_indices = @transform_3, window_bounds = array<i64: 17, 128>}, {transform_indices = @transform_4, window_bounds = array<i64: 1, 8, 128>}]} {
    %c0 = arith.constant 0 : index
    %c0_0 = arith.constant 0 : index
    %c0_1 = arith.constant 0 : index
    %0 = vector.load %arg2[%c0, %c0_0, %c0_1] : memref<1x8x1xi32, #tpu.memory_space<vmem>>, vector<1x8x1xi32>
    %1 = vector.shape_cast %0 : vector<1x8x1xi32> to vector<8x1xi32>
    %c0_2 = arith.constant 0 : index
    %c0_3 = arith.constant 0 : index
    %c0_4 = arith.constant 0 : index
    %2 = vector.load %arg3[%c0_2, %c0_3, %c0_4] : memref<1x8x1xi32, #tpu.memory_space<vmem>>, vector<1x8x1xi32>
    %3 = vector.shape_cast %2 : vector<1x8x1xi32> to vector<8x1xi32>
    %4 = tpu.iota {dimensions = array<i32: 1>} : vector<8x64xi32>
    %5 = vector.broadcast %1 : vector<8x1xi32> to vector<8x64xi32>
    %6 = arith.cmpi eq, %5, %4 : vector<8x64xi32>
    %7 = arith.extui %6 : vector<8x64xi1> to vector<8x64xi32>
    %8 = arith.sitofp %7 : vector<8x64xi32> to vector<8x64xf32>
    %9 = tpu.iota {dimensions = array<i32: 1>} : vector<8x17xi32>
    %10 = vector.broadcast %3 : vector<8x1xi32> to vector<8x17xi32>
    %11 = arith.cmpi eq, %10, %9 : vector<8x17xi32>
    %12 = arith.extui %11 : vector<8x17xi1> to vector<8x17xi32>
    %13 = arith.sitofp %12 : vector<8x17xi32> to vector<8x17xf32>
    %c0_5 = arith.constant 0 : index
    %c0_6 = arith.constant 0 : index
    %14 = vector.load %arg4[%c0_5, %c0_6] : memref<64x128xf32, #tpu.memory_space<vmem>>, vector<64x128xf32>
    %cst = arith.constant dense<0.000000e+00> : vector<8x128xf32>
    %15 = tpu.matmul %8, %14, %cst {dimension_numbers = #tpu.dot_dimension_numbers<[1], [0], [0], [1], [0, 0, 1, 1], [], []>, precision = #tpu.contract_precision<fp32>} : vector<8x64xf32>, vector<64x128xf32>, vector<8x128xf32> -> vector<8x128xf32>
    %c0_7 = arith.constant 0 : index
    %c0_8 = arith.constant 0 : index
    %16 = vector.load %arg5[%c0_7, %c0_8] : memref<17x128xf32, #tpu.memory_space<vmem>>, vector<17x128xf32>
    %cst_9 = arith.constant dense<0.000000e+00> : vector<8x128xf32>
    %17 = tpu.matmul %13, %16, %cst_9 {dimension_numbers = #tpu.dot_dimension_numbers<[1], [0], [0], [1], [0, 0, 1, 1], [], []>, precision = #tpu.contract_precision<fp32>} : vector<8x17xf32>, vector<17x128xf32>, vector<8x128xf32> -> vector<8x128xf32>
    %18 = arith.addf %15, %17 : vector<8x128xf32>
    %c0_10 = arith.constant 0 : index
    %c0_11 = arith.constant 0 : index
    %c0_12 = arith.constant 0 : index
    %19 = vector.load %arg6[%c0_10, %c0_11, %c0_12] : memref<1x8x128xf32, #tpu.memory_space<vmem>>, vector<1x8x128xf32>
    %20 = vector.shape_cast %19 : vector<1x8x128xf32> to vector<8x128xf32>
    %21 = vector.shape_cast %18 : vector<8x128xf32> to vector<1x8x128xf32>
    tpu.vector_store %arg6[%c0_10, %c0_11, %c0_12], %21 {strides = array<i32>} : memref<1x8x128xf32, #tpu.memory_space<vmem>>, vector<1x8x128xf32>,
    return
  }
  func.func @transform_0(%arg0: i32, %arg1: i32) -> (i32, i32, i32) {
    %c0_i32 = arith.constant 0 : i32
    %c0_i32_0 = arith.constant 0 : i32
    return %arg0, %arg1, %c0_i32 : i32, i32, i32
  }
  func.func @transform_1(%arg0: i32, %arg1: i32) -> (i32, i32, i32) {
    %c0_i32 = arith.constant 0 : i32
    %c0_i32_0 = arith.constant 0 : i32
    return %arg0, %arg1, %c0_i32 : i32, i32, i32
  }
  func.func @transform_2(%arg0: i32, %arg1: i32) -> (i32, i32) {
    %c0_i32 = arith.constant 0 : i32
    %c0_i32_0 = arith.constant 0 : i32
    %c0_i32_1 = arith.constant 0 : i32
    return %c0_i32, %c0_i32_0 : i32, i32
  }
  func.func @transform_3(%arg0: i32, %arg1: i32) -> (i32, i32) {
    %c0_i32 = arith.constant 0 : i32
    %c0_i32_0 = arith.constant 0 : i32
    %c0_i32_1 = arith.constant 0 : i32
    return %c0_i32, %c0_i32_0 : i32, i32
  }
  func.func @transform_4(%arg0: i32, %arg1: i32) -> (i32, i32, i32) {
    %c0_i32 = arith.constant 0 : i32
    %c0_i32_0 = arith.constant 0 : i32
    return %arg0, %arg1, %c0_i32 : i32, i32, i32
  }
}

</mosaic_0001>

<bundles_post_ra>
// kernel: tpu_custom_call.1
= control target key start
LH: loop header
LB: loop body
LE: loop exit
PB: predicated region body
PF: predicated region fallthrough
CT: control target
= control target key end

     0   :  { %9 = vsyncpa [#allocation3], 0  ;;  %s2321_s0 = inlined_call_operand.vmem [shape: s32[2,8,1], index: 0, kind: input, shape index: {}]   ;;  %s2322_s1 = inlined_call_operand.vmem [shape: s32[2,8,1], index: 1, kind: input, shape index: {}]   ;;  %s2323_s2 = inlined_call_operand.hbm [shape: f32[64,128], index: 2, kind: input, shape index: {}]   ;;  %s2324_s3 = inlined_call_operand.vmem [shape: f32[17,128], index: 3, kind: input, shape index: {}]   ;;  %s2325_s4 = inlined_call_operand.hbm [shape: f32[2,8,128], index: 4, kind: output, shape index: {}]  }
   0x1   :  { %10 = vsyncpa [#allocation4], 0 }
   0x2   :  { %12 = vsyncpa [#allocation4 + $0x1], 0  ;;  %s1903_s15 = smov 0   ;;  %s1905_s16 = smov 0  }
   0x3   :  { %s1907_s17 = smov 0   ;;  %s1909_s18 = smov 0  }
   0x4   :  { %s1911_s19 = smov 0   ;;  %s1913_s20 = smov 0  }
   0x5 LB: > { %s1423_s21 = sadd.s32 4294967295, %s1869_s20   ;;  %s1424_s22 = sadd.s32 4294967294, %s1869_s20   ;;  %s1869_s20 = sphi %s1913_s20, %s18_s20   ;;  %s1865_s19 = sphi %s1911_s19, %s2334_s19   ;;  %s1861_s18 = sphi %s1909_s18, %s2333_s18   ;;  %s1857_s17 = sphi %s1907_s17, %s2332_s17   ;;  %s1853_s16 = sphi %s1905_s16, %s2331_s16   ;;  %s1849_s15 = sphi %s1903_s15, %s2330_s15  }
   0x6   : > { %s30_s23 = sadd.s32 1, %s1865_s19  ;;  %s137_s24 = sadd.s32 1, %s1857_s17 }
   0x7   : > { %p32_p0 = scmp.ge.s32.totalorder %s30_s23, 2  ;;  %p147_p1 = scmp.ne.s32.totalorder %s1857_s17, %s1853_s16 }
   0x8   : > { %p148_p2 = scmp.eq.s32.totalorder %s1423_s21, 1  ;;  %p153_p3 = scmp.ne.s32.totalorder %s1853_s16, %s1849_s15 }
   0x9   : > { %s2336_s23 = smov (%p32_p0, %s30_s23), 0  ;;  %p154_p5 = scmp.eq.s32.totalorder %s1424_s22, 1 }
   0xa   : > { %p1943_p4 = por %p148_p2, %p147_p1  ;;  %s132_s26 = ssub.s32 %s1865_s19, %s2336_s23 }
   0xb   : > { %p1425_p6 = scmp.ge.s32.totalorder %s1869_s20, 1  ;;  %p135_p7 = scmp.eq.s32.totalorder %s132_s26, 0 }
   0xc   : > { %p1950_p8 = por %p154_p5, %p153_p3  ;;  %p161_p9 = scmp.lt.s32.totalorder %s1869_s20, 3 }
   0xd   : > { %s1956_s28 = scalar_select %p135_p7, %s1857_s17, %s137_s24  }
   0xe   : > { %p1958_p10 = pnand %p1425_p6, %p161_p9  ;;  %p1962_p11 = scmp.eq.s32.totalorder %s1423_s21, 0 }
   0xf   : > { %s1871_s5 = smov [#allocation2]  }
  0x10   : > { %p1697_p12 = pneg %p1958_p10  ;;  %s173_s6 = sshll.u32 %s1871_s5, 4  ;;  %s174_s6 = int_to_ptr.vmem [resolvable:$true] %s173_s6 }
  0x11   : > { %s1774_s7 = scalar_lea.vmem %s174_s6, 1024  ;;  %p1782_p5 = scmp.lt.s32.totalorder %s174_s6, %s174_s6 }
  0x12   : > { %p1698_p13 = pnand %p1962_p11, %p1697_p12  ;;  %p1775_p1 = scmp.ne.s32.totalorder %s174_s6, %s1774_s7 }
  0x13   : > { %p1783_p6 = scmp.lt.s32.totalorder %s1774_s7, %s1774_s7 }
  0x14   : > { %p1765_p0 = pneg %p1698_p13 }
  0x15   : > { %p1784_p7 = por %p1783_p6, %p1782_p5 }
  0x16   : > { %p1777_p2 = pnand %p1775_p1, %p1765_p0 }
  0x18   : > { %p1778_p3 = pneg %p1777_p2 }
  0x1a   : > { %p1785_p9 = pnand %p1784_p7, %p1778_p3 }
  0x1c   : > { %1788 = shalt.err (!%p1785_p9)
}
  0x1d   : > { %s1872_s8 = smov 128   ;;  %s1873_s9 = smov 8  }
  0x1e   : > { %1700 = dma.hbm_to_vmem [thread:$0]  (!%p1698_p13), %s2323_s2, 1024, %s174_s6, [#allocation3], %s1872_s8, %s1872_s8, %s1873_s9  }
  0x1f   : > { %212 = sbr.rel (%p1958_p10) target bundleno = 456 (0x1c8), region = 36 }
  0x24   : > { %1840 = dma.done.wait (%p1962_p11), [#allocation3], 1024  }
  0x25   : > { %1842 = vsyncadd (%p1962_p11), [#allocation3], 4294966272  ;;  %p247_p12 = scmp.lt.s32.totalorder %s1861_s18, 1  ;;  %v1874_v0 = vmov 0   ;;  %v1875_v1 = vmov 0.0   ;;  %vm292_vm0 = vcmask 1040384   ;;  %v263_v23 = vlaneseq }
  0x26   : > { %1762 = vset.pattern.permute.xlu0 %v1874_v0  ;;  %1532 = vmatprep.subr.mxu1 %v1875_v1  ;;  %vm1876_vm1 = vmmov 0   ;;  %v287_v3 = vld [vmem:[%s2324_s3 + $0x10] sm:$0x1]  ;;  %v286_v5 = vld [vmem:[%s2324_s3 + $0x8] sm:$0xff]  ;;  %v285_v6 = vld [vmem:[%s2324_s3] sm:$0xff]  ;;  %vm288_vm2 = vcmask 138240  }
  0x27   : > { %s248_s12 = scalar_select %p247_p12, %s1861_s18, 1  ;;  %1523 = vmatprep.subr.mxu0 %v1875_v1  ;;  %1538 = vmatprep.mubr.msk.f32.mxu1 %vm1876_vm1, %v1875_v1  ;;  %v294_v4 = vsel %vm292_vm0, %v287_v3, 0  ;;  %v2004_v9 = vand.u32 4294901760, %v286_v5  ;;  %v2006_v10 = vand.u32 4294901760, %v285_v6  ;;  %v284_v24 = vld [vmem:[#allocation2 + $0x38] sm:$0xff]  ;;  %v2038_v25 = vand.u32 127, %v263_v23 }
  0x28   : > { %1529 = vmatprep.mubr.msk.f32.mxu0 %vm1876_vm1, %v1875_v1  ;;  %v2002_v8 = vand.u32 4294901760, %v294_v4  ;;  %v2040_v26 = vand.u32 4294901760, %v284_v24  ;;  %v283_v27 = vld [vmem:[#allocation2 + $0x30] sm:$0xff]  ;;  %v282_v28 = vld [vmem:[#allocation2 + $0x28] sm:$0xff]  ;;  %v281_v32 = vld [vmem:[#allocation2 + $0x20] sm:$0xff]  ;;  %vm768_vm5 = vcmask 523264  }
  0x29   : > { %s1431_s13 = sshll.u32 %s248_s12, 3  ;;  %v2012_v12 = vsub.f32 %v286_v5, %v2004_v9  ;;  %v2015_v13 = vsub.f32 %v285_v6, %v2006_v10  ;;  %v2042_v30 = vand.u32 4294901760, %v283_v27  ;;  %v2051_v34 = vand.u32 4294901760, %v282_v28  ;;  %v280_v39 = vld [vmem:[#allocation2 + $0x18] sm:$0xff]  ;;  %v279_v43 = vld [vmem:[#allocation2 + $0x10] sm:$0xff]  ;;  %v278_v48 = vld [vmem:[#allocation2 + $0x8] sm:$0xff] }
  0x2a   : > { %s260_s22 = scalar_lea.vmem %s2322_s1, %s1431_s13  ;;  %s253_s29 = scalar_lea.vmem %s2321_s0, %s1431_s13  ;;  %v2009_v11 = vsub.f32 %v294_v4, %v2002_v8  ;;  %1524 = vmatpush3.msra.mxu0 %v2002_v8  ;;  %v2046_v31 = vsub.f32 %v284_v24, %v2040_v26  ;;  %v2063_v38 = vand.u32 4294901760, %v281_v32  ;;  %v2072_v44 = vand.u32 4294901760, %v280_v39  ;;  %v277_v53 = vld [vmem:[#allocation2] sm:$0xff] }
  0x2b   : > { %v262_v2 = vld [vmem:[%s260_s22] sm:$0xff]  ;;  %1525 = vmatprep.subr.mxu0 %v1875_v1  ;;  %v410_v15 = vand.u32 4294901760, %v2012_v12  ;;  %v417_v16 = vand.u32 4294901760, %v2015_v13  ;;  %v2061_v37 = vsub.f32 %v283_v27, %v2042_v30  ;;  %v2069_v42 = vsub.f32 %v282_v28, %v2051_v34  ;;  %s244_s10 = sand.u32 1, %s1853_s16   ;;  %s1442_s12 = sshll.u32 %s1861_s18, 7 }
  0x2c   : > { %272 = vperm.xlu0 %1762, %v262_v2   ;;  %v261_v7 = vld [vmem:[%s253_s29] sm:$0xff]  ;;  %v403_v14 = vand.u32 4294901760, %v2009_v11  ;;  %1526 = vmatpush3.msra.mxu0 %v2004_v9  ;;  %v874_v40 = vand.u32 4294901760, %v2046_v31  ;;  %v2077_v47 = vsub.f32 %v281_v32, %v2063_v38  ;;  %v2083_v50 = vand.u32 4294901760, %v279_v43  ;;  %s1430_s11 = sshll.u32 %s244_s10, 3  ;;  %s1323_s24 = scalar_lea.hbm %s2325_s4, %s1442_s12 }
  0x2d   : > { %1527 = vmatprep.subr.mxu0 %v1875_v1  ;;  %v411_v18 = vsub.f32 %v2012_v12, %v410_v15  ;;  %v418_v19 = vsub.f32 %v2015_v13, %v417_v16  ;;  %v881_v46 = vand.u32 4294901760, %v2061_v37  ;;  %v888_v52 = vand.u32 4294901760, %v2069_v42  ;;  %s246_s13 = scalar_lea.vmem [#allocation5], %s1430_s11  ;;  %s1311_s26 = scalar_lea.sflag [#allocation4], %s244_s10 }
  0x2e   : > { %v404_v17 = vsub.f32 %v2009_v11, %v403_v14  ;;  %1528 = vmatpush3.msra.mxu0 %v2006_v10  ;;  %v875_v49 = vsub.f32 %v2046_v31, %v874_v40  ;;  %v2091_v54 = vsub.f32 %v280_v39, %v2072_v44  ;;  %v2093_v55 = vand.u32 4294901760, %v278_v48  ;;  %s1325_s14 = sshll.u32 %s246_s13, 4  ;;  %s1877_s30 = smov [#allocation5]   ;;  %s1326_s14 = int_to_ptr.vmem [resolvable:$true] %s1325_s14 }
  0x2f   : > { %1541 = vmatprep.subr.mxu0 %v1875_v1  ;;  %v412_v21 = vand.u32 4294901760, %v411_v18  ;;  %v419_v22 = vand.u32 4294901760, %v418_v19  ;;  %v882_v56 = vsub.f32 %v2061_v37, %v881_v46  ;;  %v895_v57 = vand.u32 4294901760, %v2077_v47  ;;  %s1789_s29 = scalar_lea.vmem %s1326_s14, 128  ;;  %s1793_s5 = sshll.u32 %s1877_s30, 4  ;;  %s1794_s5 = int_to_ptr.vmem [resolvable:$false] %s1793_s5 }
  0x30   : > { %266 = vperm.xlu0 %1762, %v261_v7   ;;  %v405_v20 = vand.u32 4294901760, %v404_v17  ;;  %v876_v58 = vand.u32 4294901760, %v875_v49  ;;  %v2103_v59 = vsub.f32 %v279_v43, %v2083_v50  ;;  %v2105_v60 = vand.u32 4294901760, %v277_v53  ;;  %p1790_p10 = scmp.ne.s32.totalorder %s1326_s14, %s1789_s29  ;;  %s1795_s18 = scalar_lea.vmem %s1794_s5, 256 }
  0x31   : > { %v889_v61 = vsub.f32 %v2069_v42, %v888_v52  ;;  %v902_v62 = vand.u32 4294901760, %v2091_v54  ;;  %v2117_v63 = vsub.f32 %v278_v48, %v2093_v55  ;;  %v883_v0 = vand.u32 4294901760, %v882_v56  ;;  %p1796_p0 = scmp.lt.s32.totalorder %s1326_s14, %s1794_s5  ;;  %p1797_p1 = scmp.lt.s32.totalorder %s1795_s18, %s1789_s29 }
  0x32   : > { %1533 = vmatpush3.msra.mxu1 %v405_v20  ;;  %v896_v2 = vsub.f32 %v2077_v47, %v895_v57  ;;  %v909_v3 = vand.u32 4294901760, %v2103_v59  ;;  %v2127_v4 = vsub.f32 %v277_v53, %v2105_v60  ;;  %p1791_p11 = pnand %p1790_p10, %p1943_p4 }
  0x33   : > { %1534 = vmatprep.subr.mxu1 %v1875_v1  ;;  %v890_v6 = vand.u32 4294901760, %v889_v61  ;;  %v903_v7 = vsub.f32 %v2091_v54, %v902_v62  ;;  %p1798_p2 = por %p1797_p1, %p1796_p0 }
  0x34   : > { %1535 = vmatpush3.msra.mxu1 %v412_v21  ;;  %v923_v17 = vand.u32 4294901760, %v2127_v4  ;;  %p1792_p13 = pneg %p1791_p11 }
  0x35   : > { %1536 = vmatprep.subr.mxu1 %v1875_v1 }
  0x36   : > { %1537 = vmatpush3.msra.mxu1 %v419_v22  ;;  %p1799_p3 = pnand %p1798_p2, %p1792_p13 }
  0x37   : > { %1550 = vmatprep.subr.mxu1 %v1875_v1 }
  0xa7   : > { %v273_v29 = vpop.permute.xlu0 %272 }
  0xa8   : > { %vm274_vm3 = vcmp.eq.s32.totalorder %v273_v29, %v2038_v25 }
  0xa9   : > { %v2049_v33 = vsel %vm274_vm3, 1.0, %v1875_v1 }
  0xaa   : > { %v290_v35 = vsel %vm288_vm2, %v2049_v33, 0  ;;  %1539 = vmatmul.mubr.msk.f32.vlgmr.msra.gmra.mxu1 %vm288_vm2, %v2049_v33 }
  0xab   : > { %v365_v36 = vsub.f32 %v290_v35, %v290_v35  ;;  %1551 = vmatpush3.msra.mxu1 %v2002_v8  ;;  %1556 = vmatprep.mubr.msk.f32.mxu1 %vm1876_vm1, %v1875_v1  ;;  %v267_v5 = vpop.permute.xlu0 %266 }
  0xac   : > { %1552 = vmatprep.subr.mxu1 %v1875_v1  ;;  %vm268_vm4 = vcmp.eq.s32.totalorder %v267_v5, %v2038_v25 }
  0xad   : > { %1553 = vmatpush3.msra.mxu1 %v2004_v9  ;;  %v366_v41 = vand.u32 4294901760, %v365_v36  ;;  %v2154_v18 = vsel %vm268_vm4, 1.0, %v1875_v1 }
  0xae   : > { %1554 = vmatprep.subr.mxu1 %v1875_v1  ;;  %v770_v19 = vsel %vm768_vm5, %v2154_v18, 0 }
  0xaf   : > { %1555 = vmatpush3.msra.mxu1 %v2006_v10  ;;  %v367_v45 = vsub.f32 %v365_v36, %v366_v41  ;;  %v2173_v20 = vsub.f32 %v770_v19, %v770_v19 }
  0xb0   : > { %1557 = vmatmul.mubr.f32.vlgmr.msra.gmra.mxu1 %v366_v41  ;;  %1568 = vmatprep.subr.mxu1 %v1875_v1 }
  0xb1   : > { %1569 = vmatpush3.msra.mxu1 %v2002_v8  ;;  %v368_v51 = vand.u32 4294901760, %v367_v45  ;;  %1574 = vmatprep.mubr.msk.f32.mxu1 %vm1876_vm1, %v1875_v1  ;;  %v916_v8 = vand.u32 4294901760, %v2117_v63  ;;  %v847_v21 = vand.u32 4294901760, %v2173_v20 }
  0xb2   : > { %1570 = vmatprep.subr.mxu1 %v1875_v1 }
  0xb3   : > { %1571 = vmatpush3.msra.mxu1 %v2004_v9  ;;  %1530 = vmatmul.mubr.f32.vlgmr.msra.gmra.mxu0 %v368_v51  ;;  %v897_v9 = vand.u32 4294901760, %v896_v2  ;;  %v848_v22 = vsub.f32 %v2173_v20, %v847_v21 }
  0xb4   : > { %1542 = vmatpush3.msra.mxu0 %v2009_v11  ;;  %1572 = vmatprep.subr.mxu1 %v1875_v1  ;;  %v904_v11 = vand.u32 4294901760, %v903_v7 }
  0xb5   : > { %1543 = vmatprep.subr.mxu0 %v1875_v1  ;;  %1573 = vmatpush3.msra.mxu1 %v2006_v10  ;;  %v910_v10 = vsub.f32 %v2103_v59, %v909_v3  ;;  %v849_v23 = vand.u32 4294901760, %v848_v22 }
  0xb6   : > { %1544 = vmatpush3.msra.mxu0 %v2012_v12  ;;  %1575 = vmatmul.mubr.msk.f32.vlgmr.msra.gmra.mxu1 %vm288_vm2, %v2049_v33 }
  0xb7   : > { %1596 = vmatprep.subr.mxu1 %v1875_v1  ;;  %1545 = vmatprep.subr.mxu0 %v1875_v1  ;;  %v911_v12 = vand.u32 4294901760, %v910_v10 }
  0xb8   : > { %1597 = vmatpush3.msra.mxu1 %v876_v58  ;;  %1546 = vmatpush3.msra.mxu0 %v2015_v13 }
  0xb9   : > { %1547 = vmatprep.mubr.msk.f32.mxu0 %vm1876_vm1, %v1875_v1  ;;  %1598 = vmatprep.subr.mxu1 %v1875_v1 }
  0xba   : > { %1548 = vmatmul.mubr.f32.vlgmr.msra.gmra.mxu0 %v365_v36  ;;  %1559 = vmatprep.subr.mxu0 %v1875_v1 }
  0xbb   : > { %1599 = vmatpush3.msra.mxu1 %v883_v0  ;;  %1560 = vmatpush3.msra.mxu0 %v403_v14  ;;  %v917_v14 = vsub.f32 %v2117_v63, %v916_v8 }
  0xbc   : > { %1600 = vmatprep.subr.mxu1 %v1875_v1  ;;  %1561 = vmatprep.subr.mxu0 %v1875_v1 }
  0xbd   : > { %1601 = vmatpush3.msra.mxu1 %v890_v6  ;;  %1562 = vmatpush3.msra.mxu0 %v410_v15  ;;  %v924_v15 = vsub.f32 %v2127_v4, %v923_v17  ;;  %v918_v13 = vand.u32 4294901760, %v917_v14 }
  0xbe   : > { %1602 = vmatprep.subr.mxu1 %v1875_v1  ;;  %1563 = vmatprep.subr.mxu0 %v1875_v1 }
  0xbf   : > { %1603 = vmatpush3.msra.mxu1 %v897_v9  ;;  %1564 = vmatpush3.msra.mxu0 %v417_v16  ;;  %v925_v16 = vand.u32 4294901760, %v924_v15 }
  0xc0   : > { %1565 = vmatprep.mubr.msk.f32.mxu0 %vm1876_vm1, %v1875_v1  ;;  %1604 = vmatprep.subr.mxu1 %v1875_v1 }
  0xc1   : > { %1566 = vmatmul.mubr.msk.f32.vlgmr.msra.gmra.mxu0 %vm288_vm2, %v2049_v33  ;;  %1577 = vmatprep.subr.mxu0 %v1875_v1 }
  0xc2   : > { %1605 = vmatpush3.msra.mxu1 %v904_v11  ;;  %1578 = vmatpush3.msra.mxu0 %v2040_v26 }
  0xc3   : > { %1606 = vmatprep.subr.mxu1 %v1875_v1  ;;  %1579 = vmatprep.subr.mxu0 %v1875_v1 }
  0xc4   : > { %1607 = vmatpush3.msra.mxu1 %v911_v12  ;;  %1580 = vmatpush3.msra.mxu0 %v2042_v30 }
  0xc5   : > { %1608 = vmatprep.subr.mxu1 %v1875_v1  ;;  %1581 = vmatprep.subr.mxu0 %v1875_v1 }
  0xc6   : > { %1609 = vmatpush3.msra.mxu1 %v918_v13  ;;  %1582 = vmatpush3.msra.mxu0 %v2051_v34 }
  0xc7   : > { %1610 = vmatprep.subr.mxu1 %v1875_v1  ;;  %1583 = vmatprep.subr.mxu0 %v1875_v1 }
  0xc8   : > { %1611 = vmatpush3.msra.mxu1 %v925_v16  ;;  %1612 = vmatprep.mubr.msk.f32.mxu1 %vm1876_vm1, %v1875_v1 }
  0xc9   : > { %1584 = vmatpush3.msra.mxu0 %v2063_v38  ;;  %1613 = vmatmul.mubr.msk.f32.vlgmr.msra.gmra.mxu1 %vm768_vm5, %v2154_v18 }
  0xca   : > { %1634 = vmatprep.subr.mxu1 %v1875_v1  ;;  %1585 = vmatprep.subr.mxu0 %v1875_v1 }
  0xcb   : > { %1635 = vmatpush3.msra.mxu1 %v2040_v26  ;;  %1586 = vmatpush3.msra.mxu0 %v2072_v44 }
  0xcc   : > { %1636 = vmatprep.subr.mxu1 %v1875_v1  ;;  %1587 = vmatprep.subr.mxu0 %v1875_v1 }
  0xcd   : > { %1637 = vmatpush3.msra.mxu1 %v2042_v30  ;;  %1588 = vmatpush3.msra.mxu0 %v2083_v50 }
  0xce   : > { %1638 = vmatprep.subr.mxu1 %v1875_v1  ;;  %1589 = vmatprep.subr.mxu0 %v1875_v1 }
  0xcf   : > { %1639 = vmatpush3.msra.mxu1 %v2051_v34  ;;  %1590 = vmatpush3.msra.mxu0 %v2093_v55 }
  0xd0   : > { %1640 = vmatprep.subr.mxu1 %v1875_v1  ;;  %1591 = vmatprep.subr.mxu0 %v1875_v1 }
  0xd1   : > { %1641 = vmatpush3.msra.mxu1 %v2063_v38  ;;  %1592 = vmatpush3.msra.mxu0 %v2105_v60 }
  0xd2   : > { %1593 = vmatprep.mubr.msk.f32.mxu0 %vm1876_vm1, %v1875_v1  ;;  %1642 = vmatprep.subr.mxu1 %v1875_v1 }
  0xd3   : > { %1594 = vmatmul.mubr.f32.vlgmr.msra.gmra.mxu0 %v849_v23  ;;  %1615 = vmatprep.subr.mxu0 %v1875_v1 }
  0xd4   : > { %1643 = vmatpush3.msra.mxu1 %v2072_v44  ;;  %1616 = vmatpush3.msra.mxu0 %v2046_v31 }
  0xd5   : > { %1644 = vmatprep.subr.mxu1 %v1875_v1  ;;  %1617 = vmatprep.subr.mxu0 %v1875_v1 }
  0xd6   : > { %1645 = vmatpush3.msra.mxu1 %v2083_v50  ;;  %1618 = vmatpush3.msra.mxu0 %v2061_v37 }
  0xd7   : > { %1646 = vmatprep.subr.mxu1 %v1875_v1  ;;  %1619 = vmatprep.subr.mxu0 %v1875_v1 }
  0xd8   : > { %1647 = vmatpush3.msra.mxu1 %v2093_v55  ;;  %1620 = vmatpush3.msra.mxu0 %v2069_v42 }
  0xd9   : > { %1648 = vmatprep.subr.mxu1 %v1875_v1  ;;  %1621 = vmatprep.subr.mxu0 %v1875_v1 }
  0xda   : > { %1649 = vmatpush3.msra.mxu1 %v2105_v60  ;;  %1650 = vmatprep.mubr.msk.f32.mxu1 %vm1876_vm1, %v1875_v1 }
  0xdb   : > { %1622 = vmatpush3.msra.mxu0 %v2077_v47  ;;  %1651 = vmatmul.mubr.f32.vlgmr.msra.gmra.mxu1 %v847_v21 }
  0xdc   : > { %1672 = vmatprep.subr.mxu1 %v1875_v1  ;;  %1623 = vmatprep.subr.mxu0 %v1875_v1 }
  0xdd   : > { %1673 = vmatpush3.msra.mxu1 %v2040_v26  ;;  %1624 = vmatpush3.msra.mxu0 %v2091_v54 }
  0xde   : > { %1674 = vmatprep.subr.mxu1 %v1875_v1  ;;  %1625 = vmatprep.subr.mxu0 %v1875_v1 }
  0xdf   : > { %1675 = vmatpush3.msra.mxu1 %v2042_v30  ;;  %1626 = vmatpush3.msra.mxu0 %v2103_v59 }
  0xe0   : > { %1676 = vmatprep.subr.mxu1 %v1875_v1  ;;  %1627 = vmatprep.subr.mxu0 %v1875_v1 }
  0xe1   : > { %1677 = vmatpush3.msra.mxu1 %v2051_v34  ;;  %1628 = vmatpush3.msra.mxu0 %v2117_v63 }
  0xe2   : > { %1678 = vmatprep.subr.mxu1 %v1875_v1  ;;  %1629 = vmatprep.subr.mxu0 %v1875_v1 }
  0xe3   : > { %1679 = vmatpush3.msra.mxu1 %v2063_v38  ;;  %1630 = vmatpush3.msra.mxu0 %v2127_v4 }
  0xe4   : > { %1631 = vmatprep.mubr.msk.f32.mxu0 %vm1876_vm1, %v1875_v1  ;;  %1680 = vmatprep.subr.mxu1 %v1875_v1 }
  0xe5   : > { %1632 = vmatmul.mubr.f32.vlgmr.msra.gmra.mxu0 %v2173_v20  ;;  %1653 = vmatprep.subr.mxu0 %v1875_v1 }
  0xe6   : > { %1681 = vmatpush3.msra.mxu1 %v2072_v44  ;;  %1654 = vmatpush3.msra.mxu0 %v874_v40 }
  0xe7   : > { %1682 = vmatprep.subr.mxu1 %v1875_v1  ;;  %1655 = vmatprep.subr.mxu0 %v1875_v1 }
  0xe8   : > { %1683 = vmatpush3.msra.mxu1 %v2083_v50  ;;  %1656 = vmatpush3.msra.mxu0 %v881_v46 }
  0xe9   : > { %1684 = vmatprep.subr.mxu1 %v1875_v1  ;;  %1657 = vmatprep.subr.mxu0 %v1875_v1 }
  0xea   : > { %1685 = vmatpush3.msra.mxu1 %v2093_v55  ;;  %1658 = vmatpush3.msra.mxu0 %v888_v52 }
  0xeb   : > { %1686 = vmatprep.subr.mxu1 %v1875_v1  ;;  %1659 = vmatprep.subr.mxu0 %v1875_v1 }
  0xec   : > { %1687 = vmatpush3.msra.mxu1 %v2105_v60  ;;  %1688 = vmatprep.mubr.msk.f32.mxu1 %vm1876_vm1, %v1875_v1 }
  0xed   : > { %1660 = vmatpush3.msra.mxu0 %v895_v57  ;;  %1689 = vmatmul.mubr.msk.f32.vlgmr.msra.gmra.mxu1 %vm768_vm5, %v2154_v18 }
  0xee   : > { %1661 = vmatprep.subr.mxu0 %v1875_v1  ;;  %1669 = vmatprep.mubr.msk.f32.mxu0 %vm1876_vm1, %v1875_v1 }
  0xef   : > { %1662 = vmatpush3.msra.mxu0 %v902_v62 }
  0xf0   : > { %1663 = vmatprep.subr.mxu0 %v1875_v1 }
  0xf1   : > { %1664 = vmatpush3.msra.mxu0 %v909_v3 }
  0xf2   : > { %1665 = vmatprep.subr.mxu0 %v1875_v1 }
  0xf3   : > { %1666 = vmatpush3.msra.mxu0 %v916_v8 }
  0xf4   : > { %1667 = vmatprep.subr.mxu0 %v1875_v1 }
  0xf5   : > { %1668 = vmatpush3.msra.mxu0 %v923_v17 }
  0xf6   : > { %1670 = vmatmul.mubr.msk.f32.vlgmr.msra.gmra.mxu0 %vm768_vm5, %v2154_v18 }
 0x16a   : > { %v456_v24 = vpop.f32.mrf.mxu1 }
 0x16c   : > { %v1540_v25 = vpop.f32.mrf.mxu1 }
 0x170   : > { %v610_v26 = vpop.f32.mrf.mxu1 }
 0x172   : > { %v1558_v27 = vpop.f32.mrf.mxu1 }
 0x173   : > { %v370_v28 = vpop.f32.mrf.mxu0 }
 0x174   : > { %v457_v40 = vadd.f32 %v456_v24, %v370_v28 }
 0x175   : > { %v1531_v29 = vpop.f32.mrf.mxu0 }
 0x176   : > { %v764_v30 = vpop.f32.mrf.mxu1 }
 0x178   : > { %v1576_v31 = vpop.f32.mrf.mxu1 }
 0x17a   : > { %v534_v32 = vpop.f32.mrf.mxu0 }
 0x17b   : > { %v535_v42 = vadd.f32 %v534_v32, %v457_v40 }
 0x17c   : > { %v1549_v33 = vpop.f32.mrf.mxu0 }
 0x17d   : > { %v611_v43 = vadd.f32 %v610_v26, %v535_v42 }
 0x181   : > { %v690_v34 = vpop.f32.mrf.mxu0 }
 0x182   : > { %v691_v44 = vadd.f32 %v690_v34, %v611_v43 }
 0x183   : > { %v1567_v35 = vpop.f32.mrf.mxu0 }
 0x184   : > { %v765_v47 = vadd.f32 %v764_v30, %v691_v44 }
 0x189   : > { %v962_v1 = vpop.f32.mrf.mxu1 }
 0x18b   : > { %v1614_v36 = vpop.f32.mrf.mxu1 }
 0x193   : > { %v851_v37 = vpop.f32.mrf.mxu0 }
 0x194   : > { %v852_v48 = vadd.f32 %v851_v37, %v765_v47 }
 0x195   : > { %v1595_v38 = vpop.f32.mrf.mxu0 }
 0x196   : > { %v963_v50 = vadd.f32 %v962_v1, %v852_v48 }
 0x19b   : > { %v1131_v39 = vpop.f32.mrf.mxu1 }
 0x19d   : > { %v1652_v41 = vpop.f32.mrf.mxu1 }
 0x1a5   : > { %v1050_v45 = vpop.f32.mrf.mxu0 }
 0x1a6   : > { %v1051_v52 = vadd.f32 %v1050_v45, %v963_v50 }
 0x1a7   : > { %v1633_v46 = vpop.f32.mrf.mxu0 }
 0x1a8   : > { %v1132_v53 = vadd.f32 %v1131_v39, %v1051_v52 }
 0x1ad   : > { %v1305_v49 = vpop.f32.mrf.mxu1 }
 0x1af   : > { %v1690_v51 = vpop.f32.mrf.mxu1 }
 0x1b6   : > { %v1226_v54 = vpop.f32.mrf.mxu0 }
 0x1b7   : > { %v1227_v55 = vadd.f32 %v1226_v54, %v1132_v53 }
 0x1b8   : > { %v1671_v56 = vpop.f32.mrf.mxu0 }
 0x1b9   : > { %v1306_v57 = vadd.f32 %v1305_v49, %v1227_v55 }
 0x1bb   : > { %1309 = vst [vmem:[%s246_s13] sm:$0xff] %v1306_v57 }
 0x1bc   : > { %1802 = shalt.err (!%p1799_p3)
}
 0x1bd   : > { %s1803_s6 = scalar_lea.hbm %s1323_s24, 128  ;;  %s1807_s9 = scalar_lea.hbm %s2325_s4, 256 }
 0x1be   : > { %p1804_p5 = scmp.ne.s32.totalorder %s1323_s24, %s1803_s6  ;;  %p1808_p9 = scmp.lt.s32.totalorder %s1323_s24, %s2325_s4 }
 0x1bf   : > { %p1809_p12 = scmp.lt.s32.totalorder %s1807_s9, %s1803_s6 }
 0x1c0   : > { %p1805_p6 = pnand %p1804_p5, %p1943_p4 }
 0x1c1   : > { %p1810_p10 = por %p1809_p12, %p1808_p9 }
 0x1c2   : > { %p1806_p7 = pneg %p1805_p6 }
 0x1c4   : > { %p1811_p11 = pnand %p1810_p10, %p1806_p7 }
 0x1c6   : > { %1814 = shalt.err (!%p1811_p11)
}
 0x1c7   : > { %1695 = dma.vmem_to_hbm [thread:$0]  (%p1943_p4), %s1326_s14, 128, %s1323_s24, %s1311_s26  }
 0x1c8 PF: > { %p1707_p13 = scmp.ge.s32.totalorder %s1869_s20, 2  ;;  %s1337_s12 = sand.u32 1, %s1849_s15  }
 0x1c9   : > { %s1338_s13 = scalar_lea.sflag [#allocation4], %s1337_s12 }
 0x1ca   : > { %p1702_p0 = pnand %p1707_p13, %p1950_p8 }
 0x1cc   : > { %p1703_p1 = pneg %p1702_p0 }
 0x1ce   : > { %1844 = dma.done.wait (%p1703_p1), %s1338_s13, 128  }
 0x1cf   : > { %1846 = vsyncadd (%p1703_p1), %s1338_s13, 4294967168  ;;  %s18_s20 = sadd.s32 1, %s1869_s20   ;;  %s2330_s15 = smov %s1853_s16 }
 0x1d0   : > { %p15_p2 = scmp.ge.s32.totalorder %s18_s20, 4   ;;  %s2331_s16 = smov %s1857_s17 }
 0x1d1   : > { %s2332_s17 = smov %s1956_s28  ;;  %s2333_s18 = smov %s1865_s19 }
 0x1d2   : > { %s2334_s19 = smov %s2336_s23  ;;  %17 = sbr.rel (!%p15_p2) target bundleno = 5 (0x5), region = 79 }
 0x1d7   :  { %1343 = vsyncpa [#allocation3], 1 }
 0x1d8   :  { %1345 = vsyncpa [#allocation3 + $0x1], 1 }
 0x1d9   :  { %1346 = vsyncpa [#allocation4], 1 }
 0x1da   :  { %1348 = vsyncpa [#allocation4 + $0x1], 1 }

</bundles_post_ra>
